<compile_context>
chip_gen: v7x
topology: tpu7x:2x2x1
jax: 0.10.0
libtpu: 0.0.40
codegen_flags: <defaults>
</compile_context>

<pallas_src>
import jax
import jax.numpy as jnp
import numpy as np
from jax import lax
from jax.experimental import pallas as pl
from jax.experimental.pallas import tpu as pltpu

EPS = 1e-5


# ----------------------------- fused Pallas kernel ---------------------------

def _make_bottleneck_kernel(H, W):
    HW = H * W

    def kernel(x_ref, w1_ref, s1_ref, b1_ref,
               w2_ref, s2_ref, b2_ref,
               w3_ref, s3_ref, b3_ref, o_ref):
        # x_ref: (1, Cin, HW)  -- channels on sublane, H*W on lane (lane-dense)
        x = x_ref[0].astype(jnp.float32)                       # (Cin, HW)

        # ---- conv1 (1x1) + bn1 + relu -> (width, HW) -------------------------
        h1 = jnp.dot(w1_ref[...], x, preferred_element_type=jnp.float32)
        h1 = jnp.maximum(h1 * s1_ref[...] + b1_ref[...], 0.0)

        # ---- polar pad + conv2 (3x3) + bn2 + relu ----------------------------
        # Polar padding = circular wrap in H, zero pad in W.  On the flattened
        # H*W lane axis a shift of dy*W (mod H*W) is exactly the circular H
        # shift; the dx shift wraps across rows, so the W borders are masked.
        col = lax.broadcasted_iota(jnp.int32, (1, HW), 1) % W   # output w index
        keep_right = col != (W - 1)                             # for dx == +1
        keep_left = col != 0                                    # for dx == -1

        taps = []
        for dy in (-1, 0, 1):                                   # static unroll
            for dx in (-1, 0, 1):
                t = pltpu.roll(h1, shift=(-(dy * W + dx)) % HW, axis=1)
                if dx == 1:
                    t = jnp.where(keep_right, t, 0.0)
                elif dx == -1:
                    t = jnp.where(keep_left, t, 0.0)
                taps.append(t)
        im2col = jnp.concatenate(taps, axis=0)                  # (9*width, HW)

        h2 = jnp.dot(w2_ref[...], im2col, preferred_element_type=jnp.float32)
        h2 = jnp.maximum(h2 * s2_ref[...] + b2_ref[...], 0.0)   # (width, HW)

        # ---- conv3 (1x1) + bn3 + residual add + relu -------------------------
        h3 = jnp.dot(w3_ref[...], h2, preferred_element_type=jnp.float32)
        h3 = h3 * s3_ref[...] + b3_ref[...] + x                 # (cout, HW)
        o_ref[0] = jnp.maximum(h3, 0.0).astype(o_ref.dtype)

    return kernel


# ----------------------------- forward wrapper --------------------------------

def bottleneck_forward(x_nchw, params, dilation=1):
    """x_nchw: (N, inplanes, H, W) -> (N, planes*2, H, W). stride=1, groups=1."""
    assert dilation == 1, "module only preserves spatial dims for dilation=1"
    N, Cin, H, W = x_nchw.shape
    HW = H * W
    width = params["w1t"].shape[0]
    cout = params["w3t"].shape[0]
    assert cout == Cin, "downsample=None requires inplanes == planes*expansion"

    x = x_nchw.reshape(N, Cin, HW)   # channels on sublane, H*W on lane

    flops = 2 * N * HW * (Cin * width + 9 * width * width + width * cout)
    bytes_accessed = 4 * (x.size + N * cout * HW +
                          params["w1t"].size + params["w2m"].size +
                          params["w3t"].size)

    full = lambda n: (0, 0)
    out = pl.pallas_call(
        _make_bottleneck_kernel(H, W),
        out_shape=jax.ShapeDtypeStruct((N, cout, HW), x_nchw.dtype),
        grid=(N,),
        in_specs=[
            pl.BlockSpec((1, Cin, HW), lambda n: (n, 0, 0)),
            pl.BlockSpec((width, Cin), full),
            pl.BlockSpec((width, 1), full),
            pl.BlockSpec((width, 1), full),
            pl.BlockSpec((width, 9 * width), full),
            pl.BlockSpec((width, 1), full),
            pl.BlockSpec((width, 1), full),
            pl.BlockSpec((cout, width), full),
            pl.BlockSpec((cout, 1), full),
            pl.BlockSpec((cout, 1), full),
        ],
        out_specs=pl.BlockSpec((1, cout, HW), lambda n: (n, 0, 0)),
        compiler_params=pltpu.CompilerParams(
            dimension_semantics=("parallel",)),
        cost_estimate=pl.CostEstimate(flops=flops, transcendentals=0,
                                      bytes_accessed=bytes_accessed),
    )(x, params["w1t"], params["s1"], params["b1"],
      params["w2m"], params["s2"], params["b2"],
      params["w3t"], params["s3"], params["b3"])

    return out.reshape(N, cout, H, W)


# ----------------------------- pure-JAX reference -----------------------------

def ref_forward(x, w1, w2, w3, bn1, bn2, bn3):
    def bn(y, g, b, m, v):
        s = g / jnp.sqrt(v + EPS)
        return (y - m[None, :, None, None]) * s[None, :, None, None] \
            + b[None, :, None, None]

    dn = ("NCHW", "OIHW", "NCHW")
    out = lax.conv_general_dilated(x, w1, (1, 1), "VALID", dimension_numbers=dn)
    out = jax.nn.relu(bn(out, *bn1))
    # PolarPadding(1): zero-pad W, circular-wrap H
    out = jnp.pad(out, ((0, 0), (0, 0), (0, 0), (1, 1)))
    out = jnp.concatenate([out[:, :, -1:, :], out, out[:, :, :1, :]], axis=2)
    out = lax.conv_general_dilated(out, w2, (1, 1), "VALID", dimension_numbers=dn)
    out = jax.nn.relu(bn(out, *bn2))
    out = lax.conv_general_dilated(out, w3, (1, 1), "VALID", dimension_numbers=dn)
    out = bn(out, *bn3) + x
    return jax.nn.relu(out)


# ----------------------------------- main --------------------------------------

if __name__ == "__main__":
    N, planes, H, W = 2, 4, 16, 16
    inplanes = planes * 2          # = 8; required by residual add (downsample=None)
    width = planes                 # base_width=64, groups=1 -> width = planes

    keys = jax.random.split(jax.random.PRNGKey(0), 8)
    x = jax.random.normal(keys[0], (N, inplanes, H, W), jnp.float32)

    # PyTorch-shaped (OIHW) weights, deterministic init
    w1_oihw = 0.3 * jax.random.normal(keys[1], (width, inplanes, 1, 1), jnp.float32)
    w2_oihw = 0.2 * jax.random.normal(keys[2], (width, width, 3, 3), jnp.float32)
    w3_oihw = 0.3 * jax.random.normal(keys[3], (planes * 2, width, 1, 1), jnp.float32)

    def bn_params(k, c):
        k1, k2, k3, k4 = jax.random.split(k, 4)
        gamma = 1.0 + 0.1 * jax.random.normal(k1, (c,), jnp.float32)
        beta = 0.1 * jax.random.normal(k2, (c,), jnp.float32)
        mean = 0.1 * jax.random.normal(k3, (c,), jnp.float32)
        var = 1.0 + 0.1 * jax.random.uniform(k4, (c,), jnp.float32)
        return gamma, beta, mean, var

    bn1 = bn_params(keys[4], width)
    bn2 = bn_params(keys[5], width)
    bn3 = bn_params(keys[6], planes * 2)

    def fold_bn(g, b, m, v):
        s = g / jnp.sqrt(v + EPS)
        return s.reshape(-1, 1), (b - m * s).reshape(-1, 1)   # column vectors

    params = {
        # conv1: (width, inplanes)   -- operates on (Cin, HW) activations
        "w1t": w1_oihw[:, :, 0, 0],
        # conv2: OIHW -> (O, ky, kx, I) -> (O, 9*I), matching the kernel's
        # ky-major / kx / channel im2col stacking order.
        "w2m": jnp.transpose(w2_oihw, (0, 2, 3, 1)).reshape(width, 9 * width),
        # conv3: (planes*2, width)
        "w3t": w3_oihw[:, :, 0, 0],
    }
    params["s1"], params["b1"] = fold_bn(*bn1)
    params["s2"], params["b2"] = fold_bn(*bn2)
    params["s3"], params["b3"] = fold_bn(*bn3)

    out = jax.block_until_ready(bottleneck_forward(x, params))

    ref = jax.block_until_ready(ref_forward(x, w1_oihw, w2_oihw, w3_oihw,
                                            bn1, bn2, bn3))
    np.testing.assert_allclose(np.asarray(out), np.asarray(ref),
                               atol=1e-4, rtol=1e-3)
    assert out.shape == (N, planes * 2, H, W)

    # TODO(synk): at real ResNet widths (Cin up to 1024) feed bf16 operands to
    # the MXU with 256-aligned channel tiles (128 on v5e) and re-derive the
    # per-batch tile against v7x's 64 MiB VMEM; kept f32 here for exactness.
    print("KERNEL_OK")
</pallas_src>

<mosaic_0001>
module attributes {stable_mosaic.version = 11 : i64} {
  func.func @kernel(%arg0: i32, %arg1: memref<1x8x256xf32, #tpu.memory_space<vmem>>, %arg2: memref<4x8xf32, #tpu.memory_space<vmem>>, %arg3: memref<4x1xf32, #tpu.memory_space<vmem>>, %arg4: memref<4x1xf32, #tpu.memory_space<vmem>>, %arg5: memref<4x36xf32, #tpu.memory_space<vmem>>, %arg6: memref<4x1xf32, #tpu.memory_space<vmem>>, %arg7: memref<4x1xf32, #tpu.memory_space<vmem>>, %arg8: memref<8x4xf32, #tpu.memory_space<vmem>>, %arg9: memref<8x1xf32, #tpu.memory_space<vmem>>, %arg10: memref<8x1xf32, #tpu.memory_space<vmem>>, %arg11: memref<1x8x256xf32, #tpu.memory_space<vmem>>) attributes {dimension_semantics = [#tpu.dimension_semantics<parallel>], iteration_bounds = array<i64: 2>, scalar_prefetch = 0 : i64, scratch_operands = 0 : i64, tpu.core_type = #tpu.core_type<tc>, window_params = [{transform_indices = @transform_0, window_bounds = array<i64: 1, 8, 256>}, {pipeline_mode = #tpu.pipeline_mode<synchronous>, transform_indices = @transform_1, window_bounds = array<i64: 4, 8>}, {pipeline_mode = #tpu.pipeline_mode<synchronous>, transform_indices = @transform_2, window_bounds = array<i64: 4, 1>}, {pipeline_mode = #tpu.pipeline_mode<synchronous>, transform_indices = @transform_3, window_bounds = array<i64: 4, 1>}, {pipeline_mode = #tpu.pipeline_mode<synchronous>, transform_indices = @transform_4, window_bounds = array<i64: 4, 36>}, {pipeline_mode = #tpu.pipeline_mode<synchronous>, transform_indices = @transform_5, window_bounds = array<i64: 4, 1>}, {pipeline_mode = #tpu.pipeline_mode<synchronous>, transform_indices = @transform_6, window_bounds = array<i64: 4, 1>}, {pipeline_mode = #tpu.pipeline_mode<synchronous>, transform_indices = @transform_7, window_bounds = array<i64: 8, 4>}, {pipeline_mode = #tpu.pipeline_mode<synchronous>, transform_indices = @transform_8, window_bounds = array<i64: 8, 1>}, {pipeline_mode = #tpu.pipeline_mode<synchronous>, transform_indices = @transform_9, window_bounds = array<i64: 8, 1>}, {transform_indices = @transform_10, window_bounds = array<i64: 1, 8, 256>}]} {
    %c0 = arith.constant 0 : index
    %c0_0 = arith.constant 0 : index
    %c0_1 = arith.constant 0 : index
    %0 = vector.load %arg1[%c0, %c0_0, %c0_1] : memref<1x8x256xf32, #tpu.memory_space<vmem>>, vector<1x8x256xf32>
    %1 = vector.shape_cast %0 : vector<1x8x256xf32> to vector<8x256xf32>
    %c0_2 = arith.constant 0 : index
    %c0_3 = arith.constant 0 : index
    %2 = vector.load %arg2[%c0_2, %c0_3] : memref<4x8xf32, #tpu.memory_space<vmem>>, vector<4x8xf32>
    %cst = arith.constant dense<0.000000e+00> : vector<4x256xf32>
    %3 = tpu.matmul %2, %1, %cst {dimension_numbers = #tpu.dot_dimension_numbers<[1], [0], [0], [1], [0, 0, 1, 1], [], []>} : vector<4x8xf32>, vector<8x256xf32>, vector<4x256xf32> -> vector<4x256xf32>
    %c0_4 = arith.constant 0 : index
    %c0_5 = arith.constant 0 : index
    %4 = vector.load %arg3[%c0_4, %c0_5] : memref<4x1xf32, #tpu.memory_space<vmem>>, vector<4x1xf32>
    %5 = vector.broadcast %4 : vector<4x1xf32> to vector<4x256xf32>
    %6 = arith.mulf %3, %5 : vector<4x256xf32>
    %c0_6 = arith.constant 0 : index
    %c0_7 = arith.constant 0 : index
    %7 = vector.load %arg4[%c0_6, %c0_7] : memref<4x1xf32, #tpu.memory_space<vmem>>, vector<4x1xf32>
    %8 = vector.broadcast %7 : vector<4x1xf32> to vector<4x256xf32>
    %9 = arith.addf %6, %8 : vector<4x256xf32>
    %cst_8 = arith.constant 0.000000e+00 : f32
    %10 = vector.broadcast %cst_8 : f32 to vector<4x256xf32>
    %11 = arith.maximumf %9, %10 : vector<4x256xf32>
    %12 = tpu.iota {dimensions = array<i32: 1>} : vector<1x256xi32>
    %c16_i32 = arith.constant 16 : i32
    %c0_i32 = arith.constant 0 : i32
    %13 = arith.cmpi eq, %c16_i32, %c0_i32 : i32
    %c1_i32 = arith.constant 1 : i32
    %14 = arith.select %13, %c1_i32, %c16_i32 : i32
    %15 = vector.broadcast %14 : i32 to vector<1x256xi32>
    %16 = arith.remsi %12, %15 : vector<1x256xi32>
    %c0_i32_9 = arith.constant 0 : i32
    %17 = vector.broadcast %c0_i32_9 : i32 to vector<1x256xi32>
    %18 = arith.cmpi ne, %16, %17 : vector<1x256xi32>
    %c0_i32_10 = arith.constant 0 : i32
    %19 = vector.broadcast %c0_i32_10 : i32 to vector<1x256xi32>
    %20 = arith.cmpi slt, %16, %19 : vector<1x256xi32>
    %c0_i32_11 = arith.constant 0 : i32
    %21 = arith.cmpi slt, %14, %c0_i32_11 : i32
    %22 = vector.broadcast %21 : i1 to vector<1x256xi1>
    %23 = vector.broadcast %22 : vector<1x256xi1> to vector<1x256xi1>
    %24 = arith.xori %20, %23 : vector<1x256xi1>
    %25 = arith.andi %24, %18 : vector<1x256xi1>
    %26 = vector.broadcast %14 : i32 to vector<1x256xi32>
    %27 = arith.addi %16, %26 : vector<1x256xi32>
    %28 = arith.select %25, %27, %16 : vector<1x256xi1>, vector<1x256xi32>
    %c15_i32 = arith.constant 15 : i32
    %29 = vector.broadcast %c15_i32 : i32 to vector<1x256xi32>
    %30 = arith.cmpi ne, %28, %29 : vector<1x256xi32>
    %c0_i32_12 = arith.constant 0 : i32
    %31 = vector.broadcast %c0_i32_12 : i32 to vector<1x256xi32>
    %32 = arith.cmpi ne, %28, %31 : vector<1x256xi32>
    %c17_i32 = arith.constant 17 : i32
    %33 = tpu.dynamic_rotate %11 by %c17_i32 dim 1 : vector<4x256xf32>, i32 -> vector<4x256xf32>
    %cst_13 = arith.constant 0.000000e+00 : f32
    %34 = vector.shape_cast %32 : vector<1x256xi1> to vector<1x256xi1>
    %35 = vector.broadcast %34 : vector<1x256xi1> to vector<4x256xi1>
    %36 = vector.broadcast %cst_13 : f32 to vector<4x256xf32>
    %37 = arith.select %35, %33, %36 : vector<4x256xi1>, vector<4x256xf32>
    %c16_i32_14 = arith.constant 16 : i32
    %38 = tpu.dynamic_rotate %11 by %c16_i32_14 dim 1 : vector<4x256xf32>, i32 -> vector<4x256xf32>
    %c15_i32_15 = arith.constant 15 : i32
    %39 = tpu.dynamic_rotate %11 by %c15_i32_15 dim 1 : vector<4x256xf32>, i32 -> vector<4x256xf32>
    %cst_16 = arith.constant 0.000000e+00 : f32
    %40 = vector.shape_cast %30 : vector<1x256xi1> to vector<1x256xi1>
    %41 = vector.broadcast %40 : vector<1x256xi1> to vector<4x256xi1>
    %42 = vector.broadcast %cst_16 : f32 to vector<4x256xf32>
    %43 = arith.select %41, %39, %42 : vector<4x256xi1>, vector<4x256xf32>
    %c1_i32_17 = arith.constant 1 : i32
    %44 = tpu.dynamic_rotate %11 by %c1_i32_17 dim 1 : vector<4x256xf32>, i32 -> vector<4x256xf32>
    %cst_18 = arith.constant 0.000000e+00 : f32
    %45 = vector.shape_cast %32 : vector<1x256xi1> to vector<1x256xi1>
    %46 = vector.broadcast %45 : vector<1x256xi1> to vector<4x256xi1>
    %47 = vector.broadcast %cst_18 : f32 to vector<4x256xf32>
    %48 = arith.select %46, %44, %47 : vector<4x256xi1>, vector<4x256xf32>
    %c0_i32_19 = arith.constant 0 : i32
    %49 = tpu.dynamic_rotate %11 by %c0_i32_19 dim 1 : vector<4x256xf32>, i32 -> vector<4x256xf32>
    %c255_i32 = arith.constant 255 : i32
    %50 = tpu.dynamic_rotate %11 by %c255_i32 dim 1 : vector<4x256xf32>, i32 -> vector<4x256xf32>
    %cst_20 = arith.constant 0.000000e+00 : f32
    %51 = vector.shape_cast %30 : vector<1x256xi1> to vector<1x256xi1>
    %52 = vector.broadcast %51 : vector<1x256xi1> to vector<4x256xi1>
    %53 = vector.broadcast %cst_20 : f32 to vector<4x256xf32>
    %54 = arith.select %52, %50, %53 : vector<4x256xi1>, vector<4x256xf32>
    %c241_i32 = arith.constant 241 : i32
    %55 = tpu.dynamic_rotate %11 by %c241_i32 dim 1 : vector<4x256xf32>, i32 -> vector<4x256xf32>
    %cst_21 = arith.constant 0.000000e+00 : f32
    %56 = vector.shape_cast %32 : vector<1x256xi1> to vector<1x256xi1>
    %57 = vector.broadcast %56 : vector<1x256xi1> to vector<4x256xi1>
    %58 = vector.broadcast %cst_21 : f32 to vector<4x256xf32>
    %59 = arith.select %57, %55, %58 : vector<4x256xi1>, vector<4x256xf32>
    %c240_i32 = arith.constant 240 : i32
    %60 = tpu.dynamic_rotate %11 by %c240_i32 dim 1 : vector<4x256xf32>, i32 -> vector<4x256xf32>
    %c239_i32 = arith.constant 239 : i32
    %61 = tpu.dynamic_rotate %11 by %c239_i32 dim 1 : vector<4x256xf32>, i32 -> vector<4x256xf32>
    %cst_22 = arith.constant 0.000000e+00 : f32
    %62 = vector.shape_cast %30 : vector<1x256xi1> to vector<1x256xi1>
    %63 = vector.broadcast %62 : vector<1x256xi1> to vector<4x256xi1>
    %64 = vector.broadcast %cst_22 : f32 to vector<4x256xf32>
    %65 = arith.select %63, %61, %64 : vector<4x256xi1>, vector<4x256xf32>
    %66 = tpu.concatenate %37, %38, %43, %48, %49, %54, %59, %60, %65 in 0 : vector<4x256xf32>, vector<4x256xf32>, vector<4x256xf32>, vector<4x256xf32>, vector<4x256xf32>, vector<4x256xf32>, vector<4x256xf32>, vector<4x256xf32>, vector<4x256xf32> -> vector<36x256xf32>
    %c0_23 = arith.constant 0 : index
    %c0_24 = arith.constant 0 : index
    %67 = vector.load %arg5[%c0_23, %c0_24] : memref<4x36xf32, #tpu.memory_space<vmem>>, vector<4x36xf32>
    %cst_25 = arith.constant dense<0.000000e+00> : vector<4x256xf32>
    %68 = tpu.matmul %67, %66, %cst_25 {dimension_numbers = #tpu.dot_dimension_numbers<[1], [0], [0], [1], [0, 0, 1, 1], [], []>} : vector<4x36xf32>, vector<36x256xf32>, vector<4x256xf32> -> vector<4x256xf32>
    %c0_26 = arith.constant 0 : index
    %c0_27 = arith.constant 0 : index
    %69 = vector.load %arg6[%c0_26, %c0_27] : memref<4x1xf32, #tpu.memory_space<vmem>>, vector<4x1xf32>
    %70 = vector.broadcast %69 : vector<4x1xf32> to vector<4x256xf32>
    %71 = arith.mulf %68, %70 : vector<4x256xf32>
    %c0_28 = arith.constant 0 : index
    %c0_29 = arith.constant 0 : index
    %72 = vector.load %arg7[%c0_28, %c0_29] : memref<4x1xf32, #tpu.memory_space<vmem>>, vector<4x1xf32>
    %73 = vector.broadcast %72 : vector<4x1xf32> to vector<4x256xf32>
    %74 = arith.addf %71, %73 : vector<4x256xf32>
    %cst_30 = arith.constant 0.000000e+00 : f32
    %75 = vector.broadcast %cst_30 : f32 to vector<4x256xf32>
    %76 = arith.maximumf %74, %75 : vector<4x256xf32>
    %c0_31 = arith.constant 0 : index
    %c0_32 = arith.constant 0 : index
    %77 = vector.load %arg8[%c0_31, %c0_32] : memref<8x4xf32, #tpu.memory_space<vmem>>, vector<8x4xf32>
    %cst_33 = arith.constant dense<0.000000e+00> : vector<8x256xf32>
    %78 = tpu.matmul %77, %76, %cst_33 {dimension_numbers = #tpu.dot_dimension_numbers<[1], [0], [0], [1], [0, 0, 1, 1], [], []>} : vector<8x4xf32>, vector<4x256xf32>, vector<8x256xf32> -> vector<8x256xf32>
    %c0_34 = arith.constant 0 : index
    %c0_35 = arith.constant 0 : index
    %79 = vector.load %arg9[%c0_34, %c0_35] : memref<8x1xf32, #tpu.memory_space<vmem>>, vector<8x1xf32>
    %80 = vector.broadcast %79 : vector<8x1xf32> to vector<8x256xf32>
    %81 = arith.mulf %78, %80 : vector<8x256xf32>
    %c0_36 = arith.constant 0 : index
    %c0_37 = arith.constant 0 : index
    %82 = vector.load %arg10[%c0_36, %c0_37] : memref<8x1xf32, #tpu.memory_space<vmem>>, vector<8x1xf32>
    %83 = vector.broadcast %82 : vector<8x1xf32> to vector<8x256xf32>
    %84 = arith.addf %81, %83 : vector<8x256xf32>
    %85 = arith.addf %84, %1 : vector<8x256xf32>
    %cst_38 = arith.constant 0.000000e+00 : f32
    %86 = vector.broadcast %cst_38 : f32 to vector<8x256xf32>
    %87 = arith.maximumf %85, %86 : vector<8x256xf32>
    %c0_39 = arith.constant 0 : index
    %c0_40 = arith.constant 0 : index
    %c0_41 = arith.constant 0 : index
    %88 = vector.load %arg11[%c0_39, %c0_40, %c0_41] : memref<1x8x256xf32, #tpu.memory_space<vmem>>, vector<1x8x256xf32>
    %89 = vector.shape_cast %88 : vector<1x8x256xf32> to vector<8x256xf32>
    %90 = vector.shape_cast %87 : vector<8x256xf32> to vector<1x8x256xf32>
    tpu.vector_store %arg11[%c0_39, %c0_40, %c0_41], %90 {strides = array<i32>} : memref<1x8x256xf32, #tpu.memory_space<vmem>>, vector<1x8x256xf32>,
    return
  }
  func.func @transform_0(%arg0: i32) -> (i32, i32, i32) {
    %c0_i32 = arith.constant 0 : i32
    %c0_i32_0 = arith.constant 0 : i32
    %c0_i32_1 = arith.constant 0 : i32
    return %arg0, %c0_i32, %c0_i32_0 : i32, i32, i32
  }
  func.func @transform_1(%arg0: i32) -> (i32, i32) {
    %c0_i32 = arith.constant 0 : i32
    %c0_i32_0 = arith.constant 0 : i32
    %c0_i32_1 = arith.constant 0 : i32
    return %c0_i32, %c0_i32_0 : i32, i32
  }
  func.func @transform_2(%arg0: i32) -> (i32, i32) {
    %c0_i32 = arith.constant 0 : i32
    %c0_i32_0 = arith.constant 0 : i32
    %c0_i32_1 = arith.constant 0 : i32
    return %c0_i32, %c0_i32_0 : i32, i32
  }
  func.func @transform_3(%arg0: i32) -> (i32, i32) {
    %c0_i32 = arith.constant 0 : i32
    %c0_i32_0 = arith.constant 0 : i32
    %c0_i32_1 = arith.constant 0 : i32
    return %c0_i32, %c0_i32_0 : i32, i32
  }
  func.func @transform_4(%arg0: i32) -> (i32, i32) {
    %c0_i32 = arith.constant 0 : i32
    %c0_i32_0 = arith.constant 0 : i32
    %c0_i32_1 = arith.constant 0 : i32
    return %c0_i32, %c0_i32_0 : i32, i32
  }
  func.func @transform_5(%arg0: i32) -> (i32, i32) {
    %c0_i32 = arith.constant 0 : i32
    %c0_i32_0 = arith.constant 0 : i32
    %c0_i32_1 = arith.constant 0 : i32
    return %c0_i32, %c0_i32_0 : i32, i32
  }
  func.func @transform_6(%arg0: i32) -> (i32, i32) {
    %c0_i32 = arith.constant 0 : i32
    %c0_i32_0 = arith.constant 0 : i32
    %c0_i32_1 = arith.constant 0 : i32
    return %c0_i32, %c0_i32_0 : i32, i32
  }
  func.func @transform_7(%arg0: i32) -> (i32, i32) {
    %c0_i32 = arith.constant 0 : i32
    %c0_i32_0 = arith.constant 0 : i32
    %c0_i32_1 = arith.constant 0 : i32
    return %c0_i32, %c0_i32_0 : i32, i32
  }
  func.func @transform_8(%arg0: i32) -> (i32, i32) {
    %c0_i32 = arith.constant 0 : i32
    %c0_i32_0 = arith.constant 0 : i32
    %c0_i32_1 = arith.constant 0 : i32
    return %c0_i32, %c0_i32_0 : i32, i32
  }
  func.func @transform_9(%arg0: i32) -> (i32, i32) {
    %c0_i32 = arith.constant 0 : i32
    %c0_i32_0 = arith.constant 0 : i32
    %c0_i32_1 = arith.constant 0 : i32
    return %c0_i32, %c0_i32_0 : i32, i32
  }
  func.func @transform_10(%arg0: i32) -> (i32, i32, i32) {
    %c0_i32 = arith.constant 0 : i32
    %c0_i32_0 = arith.constant 0 : i32
    %c0_i32_1 = arith.constant 0 : i32
    return %arg0, %c0_i32, %c0_i32_0 : i32, i32, i32
  }
}

</mosaic_0001>

<bundles_post_ra>
// kernel: tpu_custom_call.1
= control target key start
LH: loop header
LB: loop body
LE: loop exit
PB: predicated region body
PF: predicated region fallthrough
CT: control target
= control target key end

     0   :  { %15 = vsyncpa [#allocation3], 0  ;;  %s1350_s0 = inlined_call_operand.vmem [shape: f32[2,8,256], index: 0, kind: input, shape index: {}]   ;;  %s1351_s1 = inlined_call_operand.vmem [shape: f32[4,8], index: 1, kind: input, shape index: {}]   ;;  %s1352_s2 = inlined_call_operand.vmem [shape: f32[4,1], index: 2, kind: input, shape index: {}]   ;;  %s1353_s3 = inlined_call_operand.vmem [shape: f32[4,1], index: 3, kind: input, shape index: {}]   ;;  %s1354_s4 = inlined_call_operand.vmem [shape: f32[4,36], index: 4, kind: input, shape index: {}]   ;;  %s1355_s5 = inlined_call_operand.vmem [shape: f32[4,1], index: 5, kind: input, shape index: {}]   ;;  %s1356_s6 = inlined_call_operand.vmem [shape: f32[4,1], index: 6, kind: input, shape index: {}]   ;;  %s1357_s7 = inlined_call_operand.vmem [shape: f32[8,4], index: 7, kind: input, shape index: {}]   ;;  %s1358_s8 = inlined_call_operand.vmem [shape: f32[8,1], index: 8, kind: input, shape index: {}]   ;;  %s1359_s9 = inlined_call_operand.vmem [shape: f32[8,1], index: 9, kind: input, shape index: {}]   ;;  %s1360_s10 = inlined_call_operand.hbm [shape: f32[2,8,256], index: 10, kind: output, shape index: {}]  }
   0x1   :  { %17 = vsyncpa [#allocation3 + $0x1], 0  ;;  %s1117_s13 = smov 0   ;;  %s1119_s14 = smov 0  }
   0x2   :  { %s1121_s15 = smov 0   ;;  %s1123_s16 = smov 0  }
   0x3 LB: > { %s1138_s17 = sadd.s32 4294967295, %s1049_s16   ;;  %s872_s18 = sadd.s32 4294967294, %s1049_s16   ;;  %s1049_s16 = sphi %s1123_s16, %s1374_s16   ;;  %s1045_s15 = sphi %s1121_s15, %s1373_s15   ;;  %s1041_s14 = sphi %s1119_s14, %s1372_s14   ;;  %s1037_s13 = sphi %s1117_s13, %s1371_s13  }
   0x4   : > { %s1142_s19 = sadd.s32 1, %s1049_s16   ;;  %s245_s20 = sadd.s32 1, %s1045_s15 }
   0x5   : > { %s242_s21 = ssub.s32 %s1049_s16, %s1142_s19  ;;  %p255_p0 = scmp.ne.s32.totalorder %s1045_s15, %s1041_s14 }
   0x6   : > { %p243_p1 = scmp.eq.s32.totalorder %s242_s21, 0  ;;  %p256_p2 = scmp.eq.s32.totalorder %s1138_s17, 1 }
   0x7   : > { %p261_p3 = scmp.ne.s32.totalorder %s1041_s14, %s1037_s13  ;;  %p262_p4 = scmp.eq.s32.totalorder %s872_s18, 1 }
   0x8   : > { %s1153_s22 = scalar_select %p243_p1, %s1045_s15, %s245_s20  }
   0x9   : > { %p1155_p5 = por %p256_p2, %p255_p0  ;;  %p1159_p6 = por %p262_p4, %p261_p3 }
   0xa   : > { %p875_p7 = scmp.ge.s32.totalorder %s1049_s16, 1  ;;  %p315_p8 = scmp.lt.s32.totalorder %s1049_s16, 3 }
   0xc   : > { %p316_p9 = pnand %p875_p7, %p315_p8 }
   0xd   : > { %p353_p10 = scmp.lt.s32.totalorder (!%p316_p9), %s1138_s17, 1  ;;  %v1051_v0 = vmov (!%p316_p9), 0.0   ;;  %v1052_v1 = vmov (!%p316_p9), 0   ;;  %v436_v2 = vld [vmem:[%s1352_s2] sm:$0xf] (!%p316_p9)  ;;  %vm361_vm0 = vcmask (!%p316_p9), 64512   ;;  %v454_v22 = vlaneseq (!%p316_p9) }
   0xe   : > { %319 = sbr.rel (%p316_p9) target bundleno = 846 (0x34e), region = 60  ;;  %429 = vmatprep.mubr.f32.mxu0 (!%p316_p9), %v1051_v0  ;;  %950 = vset.pattern.permute.xlu0 (!%p316_p9), %v1052_v1  ;;  %v444_v3 = vld [vmem:[%s1353_s3] sm:$0xf] (!%p316_p9)  ;;  %s1053_s25 = smov (!%p316_p9), 17   ;;  %vm585_vm12 = vcmask (!%p316_p9), 1043456   ;;  %vm595_vm14 = vcmask (!%p316_p9), 293888  }
   0xf   : > { %439 = vperm.xlu0 (!%p316_p9), %950, %v436_v2   ;;  %669 = vmatprep.mubr.f32.mxu1 (!%p316_p9), %v1051_v0  ;;  %v360_v6 = vld [vmem:[%s1351_s1] sm:$0xf] (!%p316_p9)  ;;  %s1054_s26 = smov (!%p316_p9), 1   ;;  %s1056_s28 = smov (!%p316_p9), 16   ;;  %v1205_v23 = vand.u32 (!%p316_p9), 127, %v454_v22  ;;  %vm695_vm15 = vcmask (!%p316_p9), 31744  }
  0x10   : > { %986 = vset.pattern.permute.xlu1 (!%p316_p9), %v1052_v1  ;;  %s1057_s29 = smov (!%p316_p9), 113   ;;  %s1059_s11 = smov (!%p316_p9), 111   ;;  %v684_v18 = vld [vmem:[%s1356_s6] sm:$0xf] (!%p316_p9) }
  0x11   : > { %s1060_s12 = smov (!%p316_p9), 112   ;;  %v784_v19 = vld [vmem:[%s1359_s9] sm:$0xff] (!%p316_p9)  ;;  %v456_v24 = vadd.s32 (!%p316_p9), 128, %v1205_v23  ;;  %v461_v26 = vand.u32 (!%p316_p9), 15, %v1205_v23  ;;  %vm522_vm1 = vcmp.lt.s32.totalorder (!%p316_p9), %v1205_v23, 1  ;;  %vm531_vm2 = vcmp.lt.s32.totalorder (!%p316_p9), %v1205_v23, 127 }
  0x12   : > { %v676_v20 = vld [vmem:[%s1355_s5] sm:$0xf] (!%p316_p9)  ;;  %vm489_vm4 = vcmp.lt.s32.totalorder (!%p316_p9), %v1205_v23, 17  ;;  %vm502_vm5 = vcmp.lt.s32.totalorder (!%p316_p9), %v1205_v23, 16  ;;  %vm540_vm7 = vcmp.lt.s32.totalorder (!%p316_p9), %v1205_v23, 113  ;;  %vm549_vm9 = vcmp.lt.s32.totalorder (!%p316_p9), %v1205_v23, 112 }
  0x13   : > { %447 = vperm.xlu0 (!%p316_p9), %950, %v444_v3   ;;  %v776_v21 = vld [vmem:[%s1358_s8] sm:$0xff] (!%p316_p9)  ;;  %v468_v25 = vand.u32 (!%p316_p9), 15, %v456_v24  ;;  %vm1217_vm6 = vcmp.ne.s32.totalorder (!%p316_p9), %v461_v26, 0  ;;  %vm1222_vm8 = vcmp.ne.s32.totalorder (!%p316_p9), %v461_v26, 15  ;;  %vm509_vm11 = vcmp.lt.s32.totalorder (!%p316_p9), %v1205_v23, 15  ;;  %s350_s20 = sand.u32 (!%p316_p9), 1, %s1041_s14  }
  0x14   : > { %vm556_vm13 = vcmp.lt.s32.totalorder (!%p316_p9), %v1205_v23, 111  ;;  %s876_s21 = sshll.u32 (!%p316_p9), %s350_s20, 4 }
  0x15   : > { %s354_s27 = scalar_select %p353_p10, %s1138_s17, 1  ;;  %vm1211_vm3 = vcmp.ne.s32.totalorder %v468_v25, 0  ;;  %vm1227_vm10 = vcmp.ne.s32.totalorder %v468_v25, 15 }
  0x17   : > { %s891_s30 = sshll.u32 %s354_s27, 4  ;;  %s1055_s27 = smov 127  }
  0x18   : > { %s357_s18 = scalar_lea.vmem %s1350_s0, %s891_s30  ;;  %s1058_s30 = smov 15  }
  0x19   : > { %v1176_v4 = vld [vmem:[%s357_s18 + $0x8] sm:$0xff]  ;;  %v1178_v5 = vld [vmem:[%s357_s18] sm:$0xff] }
  0x1a   : > { %365 = vmatprep.subr.mxu0 %v1176_v4 }
  0x1b   : > { %366 = vmatpush1.msra.mxu0 %v1178_v5 }
  0x1c   : > { %879 = vmatmul.mubr.msk.f32.vlgmr.msra.gmra.mrb[0].mxu0 %vm361_vm0, %v360_v6 }
  0x1d   : > { %769 = vmatprep.mubr.f32.mxu0 %v1051_v0 }
  0x8e   : > { %v440_v7 = vpop.permute.xlu0 %439 }
  0x92   : > { %v448_v11 = vpop.permute.xlu0 %447 }
  0xef   : > { %v431_v8 = vpop.f32.mrb[0].mxu0 }
  0xf0   : > { %v442_v9 = vmul.f32 %v440_v7, %v431_v8  ;;  %v433_v10 = vpop.f32.mrb[1].mxu0 }
  0xf1   : > { %v443_v12 = vmul.f32 %v440_v7, %v433_v10 }
  0xf2   : > { %v450_v13 = vadd.f32 %v448_v11, %v442_v9 }
  0xf3   : > { %v451_v14 = vadd.f32 %v448_v11, %v443_v12 }
  0xf4   : > { %v1185_v15 = vmax.f32 %v450_v13, 0.0 }
  0xf5   : > { %v1187_v16 = vmax.f32 %v451_v14, 0.0 }
  0xf7   : > { %v961_v17 = vpack.i.bf16 %v1187_v16, %v1185_v15 }
  0xf9   : > { %962 = vrot.lane.b32.xlu0 %v961_v17, %s1053_s25  ;;  %952 = vrot.lane.b32.xlu1 %v961_v17, %s1054_s26  ;;  %s892_s25 = sshll.u32 %s1138_s17, 8  ;;  %s352_s26 = scalar_lea.vmem [#allocation2], %s876_s21 }
  0xfd   : > { %972 = vrot.lane.b32.xlu0 %v961_v17, %s1055_s27  ;;  %957 = vrot.lane.b32.xlu1 %v961_v17, %s1056_s28  ;;  %s813_s27 = sshll.u32 %s352_s26, 4  ;;  %s1310_s27 = int_to_ptr.vmem [resolvable:$true] %s813_s27 }
  0xfe   : > { %s987_s17 = scalar_lea.vmem %s1310_s27, 256 }
  0xff   : > { %p988_p11 = scmp.ne.s32.totalorder %s1310_s27, %s987_s17 }
 0x101   : > { %982 = vrot.lane.b32.xlu0 %v961_v17, %s1057_s29  ;;  %967 = vrot.lane.b32.xlu1 %v961_v17, %s1058_s30  ;;  %s1308_s30 = scalar_lea.hbm %s1360_s10, %s892_s25  ;;  %p989_p12 = pnand %p988_p11, %p1155_p5 }
 0x103   : > { %p990_p13 = pneg %p989_p12 }
 0x105   : > { %554 = vrot.lane.b32.xlu0 %v1187_v16, %s1059_s11  ;;  %977 = vrot.lane.b32.xlu1 %v961_v17, %s1060_s12  ;;  %s1061_s12 = smov [#allocation2]  }
 0x106   : > { %s991_s18 = sshll.u32 %s1061_s12, 4  ;;  %s992_s18 = int_to_ptr.vmem [resolvable:$false] %s991_s18 }
 0x107   : > { %s993_s21 = scalar_lea.vmem %s992_s18, 512  ;;  %p994_p0 = scmp.lt.s32.totalorder %s1310_s27, %s992_s18 }
 0x108   : > { %p995_p1 = scmp.lt.s32.totalorder %s993_s21, %s987_s17 }
 0x109   : > { %687 = vperm.xlu0 %950, %v684_v18   ;;  %552 = vrot.lane.b32.xlu1 %v1185_v15, %s1059_s11  ;;  %s799_s11 = scalar_lea.sflag [#allocation3], %s350_s20 }
 0x10a   : > { %p996_p2 = por %p995_p1, %p994_p0 }
 0x10c   : > { %p997_p3 = pnand %p996_p2, %p990_p13 }
 0x10d   : > { %787 = vperm.xlu0 %950, %v784_v19   ;;  %679 = vperm.xlu1 %986, %v676_v20  }
 0x111   : > { %779 = vperm.xlu1 %986, %v776_v21  }
 0x16b   : > { %v963_v27 = vpop.permute.xlu0 %962  ;;  %v953_v28 = vpop.permute.xlu1 %952 }
 0x16c   : > { %v955_v29 = vunpack.i.h.bf16 %v953_v28  ;;  %v954_v30 = vunpack.i.l.bf16 %v953_v28  ;;  %v965_v32 = vunpack.i.h.bf16 %v963_v27  ;;  %v964_v33 = vunpack.i.l.bf16 %v963_v27 }
 0x16e   : > { %v523_v35 = vsel %vm522_vm1, %v954_v30, %v955_v29  ;;  %v524_v36 = vsel %vm522_vm1, %v955_v29, %v954_v30  ;;  %v490_v45 = vsel %vm489_vm4, %v964_v33, %v965_v32  ;;  %v491_v47 = vsel %vm489_vm4, %v965_v32, %v964_v33 }
 0x16f   : > { %v973_v38 = vpop.permute.xlu0 %972  ;;  %v958_v39 = vpop.permute.xlu1 %957  ;;  %v526_v46 = vsel %vm1211_vm3, %v523_v35, 0.0  ;;  %v525_v48 = vsel %vm1217_vm6, %v524_v36, 0.0  ;;  %v497_v61 = vsel %vm1211_vm3, %v490_v45, 0.0  ;;  %v496_v62 = vsel %vm1217_vm6, %v491_v47, 0.0 }
 0x170   : > { %v975_v41 = vunpack.i.h.bf16 %v973_v38  ;;  %v974_v42 = vunpack.i.l.bf16 %v973_v38  ;;  %v960_v43 = vunpack.i.h.bf16 %v958_v39  ;;  %v959_v44 = vunpack.i.l.bf16 %v958_v39 }
 0x171   : > { %v570_v1 = vrot.slane %v526_v46, 4  ;;  %v569_v2 = vrot.slane %v525_v48, 4 }
 0x172   : > { %v532_v49 = vsel %vm531_vm2, %v974_v42, %v975_v41  ;;  %v533_v50 = vsel %vm531_vm2, %v975_v41, %v974_v42  ;;  %v504_v51 = vsel %vm502_vm5, %v960_v43, %v959_v44  ;;  %v503_v52 = vsel %vm502_vm5, %v959_v44, %v960_v43 }
 0x173   : > { %v563_v53 = vrot.slane %v504_v51, 4  ;;  %v983_v54 = vpop.permute.xlu0 %982  ;;  %v968_v55 = vpop.permute.xlu1 %967  ;;  %v534_v56 = vsel %vm1222_vm8, %v532_v49, 0.0  ;;  %v535_v57 = vsel %vm1227_vm10, %v533_v50, 0.0  ;;  %v564_v58 = vrot.slane %v503_v52, 4  ;;  %v694_v52 = vld [vmem:[%s1357_s7] sm:$0xff] }
 0x174   : > { %v970_v59 = vunpack.i.h.bf16 %v968_v55  ;;  %v969_v60 = vunpack.i.l.bf16 %v968_v55  ;;  %v985_v63 = vunpack.i.h.bf16 %v983_v54  ;;  %v984_v0 = vunpack.i.l.bf16 %v983_v54 }
 0x175   : > { %v575_v3 = vrot.slane %v534_v56, 4  ;;  %v576_v6 = vrot.slane %v535_v57, 4  ;;  %v587_v11 = vsel %vm585_vm12, %v497_v61, %v564_v58  ;;  %v586_v13 = vsel %vm585_vm12, %v496_v62, %v563_v53 }
 0x176   : > { %v510_v7 = vsel %vm509_vm11, %v969_v60, %v970_v59  ;;  %v511_v8 = vsel %vm509_vm11, %v970_v59, %v969_v60  ;;  %v541_v20 = vsel %vm540_vm7, %v984_v0, %v985_v63  ;;  %v542_v21 = vsel %vm540_vm7, %v985_v63, %v984_v0 }
 0x177   : > { %v978_v9 = vpop.permute.xlu1 %977  ;;  %v517_v10 = vsel %vm1227_vm10, %v510_v7, 0.0  ;;  %v516_v12 = vsel %vm1222_vm8, %v511_v8, 0.0  ;;  %v544_v30 = vsel %vm1211_vm3, %v542_v21, 0.0  ;;  %v543_v32 = vsel %vm1217_vm6, %v541_v20, 0.0  ;;  %v555_v33 = vpop.permute.xlu0 %554 }
 0x178   : > { %v980_v14 = vunpack.i.h.bf16 %v978_v9  ;;  %v979_v17 = vunpack.i.l.bf16 %v978_v9  ;;  %v589_v18 = vsel %vm585_vm12, %v517_v10, %v570_v1  ;;  %v588_v19 = vsel %vm585_vm12, %v516_v12, %v569_v2 }
 0x179   : > { %v893_v22 = vpack.c.bf16 %v589_v18, %v587_v11  ;;  %v895_v24 = vpack.c.bf16 %v588_v19, %v586_v13  ;;  %v591_v35 = vsel %vm585_vm12, %v1187_v16, %v576_v6  ;;  %v590_v38 = vsel %vm585_vm12, %v1185_v15, %v575_v3  ;;  %v594_v16 = vld [vmem:[%s1354_s4] sm:$0xf] }
 0x17a   : > { %v550_v25 = vsel %vm549_vm9, %v979_v17, %v980_v14  ;;  %v551_v26 = vsel %vm549_vm9, %v980_v14, %v979_v17 }
 0x17b   : > { %v581_v27 = vrot.slane %v550_v25, 4  ;;  %v582_v28 = vrot.slane %v551_v26, 4  ;;  %v553_v29 = vpop.permute.xlu1 %552  ;;  %894 = vmatprep.subr.bf16.mxu1 %v893_v22 }
 0x17c   : > { %896 = vmatpush1.bf16.msra.mxu1 %v895_v24  ;;  %v558_v39 = vsel %vm556_vm13, %v555_v33, %v553_v29  ;;  %v557_v31 = vsel %vm556_vm13, %v553_v29, %v555_v33 }
 0x17d   : > { %v593_v36 = vsel %vm585_vm12, %v544_v30, %v582_v28  ;;  %v592_v23 = vsel %vm585_vm12, %v543_v32, %v581_v27  ;;  %v560_v34 = vsel %vm1227_vm10, %v558_v39, 0.0  ;;  %v559_v15 = vsel %vm1222_vm8, %v557_v31, 0.0 }
 0x17e   : > { %v897_v41 = vpack.c.bf16 %v593_v36, %v591_v35  ;;  %v899_v42 = vpack.c.bf16 %v592_v23, %v590_v38 }
 0x180   : > { %898 = vmatprep.subr.bf16.mxu1 %v897_v41 }
 0x181   : > { %900 = vmatpush1.bf16.msra.mxu1 %v899_v42 }
 0x182   : > { %880 = vmatprep.subr.msk.mxu1 %vm585_vm12, %v560_v34 }
 0x185   : > { %881 = vmatpush1.msk.msra.mxu1 %vm585_vm12, %v559_v15 }
 0x186   : > { %882 = vmatmul.mubr.msk.f32.vlgmr.msra.gmra.mrb[0].mxu1 %vm595_vm14, %v594_v16 }
 0x188   : > { %v688_v46 = vpop.permute.xlu0 %687 }
 0x18c   : > { %v680_v43 = vpop.permute.xlu1 %679  ;;  %v788_v56 = vpop.permute.xlu0 %787 }
 0x190   : > { %v780_v37 = vpop.permute.xlu1 %779 }
 0x259   : > { %v671_v44 = vpop.f32.mrb[0].mxu1 }
 0x25a   : > { %v682_v45 = vmul.f32 %v680_v43, %v671_v44  ;;  %v673_v40 = vpop.f32.mrb[1].mxu1 }
 0x25b   : > { %v683_v47 = vmul.f32 %v680_v43, %v673_v40 }
 0x25c   : > { %v690_v48 = vadd.f32 %v688_v46, %v682_v45 }
 0x25d   : > { %v691_v49 = vadd.f32 %v688_v46, %v683_v47 }
 0x25e   : > { %v692_v51 = vmax.f32 %v690_v48, 0.0 }
 0x25f   : > { %v693_v50 = vmax.f32 %v691_v49, 0.0 }
 0x261   : > { %883 = vmatprep.subr.msk.mxu0 %vm585_vm12, %v693_v50 }
 0x262   : > { %884 = vmatpush1.msk.msra.mxu0 %vm585_vm12, %v692_v51 }
 0x263   : > { %885 = vmatmul.mubr.msk.f32.vlgmr.msra.gmra.mrb[2].mxu0 %vm695_vm15, %v694_v52 }
 0x336   : > { %v771_v53 = vpop.f32.mrb[2].mxu0 }
 0x337   : > { %v782_v54 = vmul.f32 %v780_v37, %v771_v53  ;;  %v773_v55 = vpop.f32.mrb[3].mxu0 }
 0x338   : > { %v783_v57 = vmul.f32 %v780_v37, %v773_v55 }
 0x339   : > { %v790_v58 = vadd.f32 %v788_v56, %v782_v54 }
 0x33a   : > { %v791_v59 = vadd.f32 %v788_v56, %v783_v57 }
 0x33b   : > { %v792_v60 = vadd.f32 %v790_v58, %v1178_v5 }
 0x33c   : > { %v793_v61 = vadd.f32 %v791_v59, %v1176_v4 }
 0x33d   : > { %v794_v62 = vmax.f32 %v792_v60, 0.0 }
 0x33e   : > { %v795_v63 = vmax.f32 %v793_v61, 0.0 }
 0x33f   : > { %796 = vst [vmem:[%s352_s26] sm:$0xff] %v794_v62 }
 0x340   : > { %797 = vst [vmem:[%s352_s26 + $0x8] sm:$0xff] %v795_v63 }
 0x341   : > { %1000 = shalt.err (!%p997_p3)
}
 0x342   : > { %s1001_s20 = scalar_lea.hbm %s1308_s30, 256  ;;  %s1005_s28 = scalar_lea.hbm %s1360_s10, 512 }
 0x343   : > { %p1002_p4 = scmp.ne.s32.totalorder %s1308_s30, %s1001_s20  ;;  %p1006_p9 = scmp.lt.u32.totalorder %s1308_s30, %s1360_s10 }
 0x344   : > { %p1007_p10 = scmp.lt.u32.totalorder %s1005_s28, %s1001_s20  ;;  %p1009_p12 = scmp.lt.u32.totalorder %s1001_s20, %s1308_s30 }
 0x345   : > { %p1003_p7 = pnand %p1002_p4, %p1155_p5 }
 0x346   : > { %p1008_p11 = por %p1007_p10, %p1006_p9 }
 0x347   : > { %p1004_p8 = pneg %p1003_p7 }
 0x348   : > { %p1010_p13 = por %p1009_p12, %p1008_p11 }
 0x34a   : > { %p1011_p0 = pnand %p1010_p13, %p1004_p8 }
 0x34c   : > { %1014 = shalt.err (!%p1011_p0)
}
 0x34d   : > { %901 = dma.vmem_to_hbm [thread:$0]  (%p1155_p5), %s1310_s27, 256, %s1308_s30, %s799_s11  }
 0x34e PF: > { %p907_p1 = scmp.ge.s32.totalorder %s1049_s16, 2  ;;  %s825_s17 = sand.u32 1, %s1037_s13  }
 0x34f   : > { %s826_s18 = scalar_lea.sflag [#allocation3], %s825_s17 }
 0x350   : > { %p904_p2 = pnand %p907_p1, %p1159_p6 }
 0x352   : > { %1032 = dma.done.wait (!%p904_p2), %s826_s18, 256  }
 0x353   : > { %1034 = vsyncadd (!%p904_p2), %s826_s18, 4294967040  ;;  %p20_p3 = scmp.ge.s32.totalorder %s1142_s19, 4   ;;  %s1371_s13 = smov %s1041_s14 }
 0x354   : > { %s1372_s14 = smov %s1045_s15  ;;  %s1373_s15 = smov %s1153_s22 }
 0x355   : > { %s1374_s16 = smov %s1142_s19  ;;  %22 = sbr.rel (!%p20_p3) target bundleno = 3 (0x3), region = 95 }
 0x35c   :  { %831 = vsyncpa [#allocation3], 1 }
 0x35d   :  { %833 = vsyncpa [#allocation3 + $0x1], 1 }

</bundles_post_ra>
